<compile_context>
chip_gen: v6e
topology: v6e:2x2x1
jax: 0.10.0
libtpu: 0.0.40
codegen_flags: <defaults>
</compile_context>

<pallas_src>
import jax
import jax.numpy as jnp
from jax.experimental import pallas as pl
from jax.experimental.pallas import tpu as pltpu


# ---------------------------------------------------------------------------
# Conv2d(C, Co, 3, stride=2, padding=1) — polyphase taps + MXU matmuls
# ---------------------------------------------------------------------------
def _conv3x3s2_kernel(pe_ref, peh_ref, po_ref, w_ref, b_ref, o_ref):
    """One (batch, output-row-tile, Co-tile) grid step.

    pe_ref : (2, tho, Wo+1, C)  even-row phases [P00, P01] for output rows j
    peh_ref: (2, 1,   Wo+1, C)  even-row phases at output row tho*(r+1) (halo)
    po_ref : (2, tho, Wo+1, C)  odd-row phases  [P10, P11]
    w_ref  : (9, C, tco)        weight taps, tap index t = kh*3 + kw
    b_ref  : (1, tco)           float32 bias
    o_ref  : (tho, Wo, tco)

    with P_{a,b}[i, j] = x_pad[2*i + a, 2*j + b].
    """
    tho, Wo, tco = o_ref.shape
    C = pe_ref.shape[-1]

    p00 = pe_ref[0]          # (tho, Wo+1, C)   x_pad[2*ho    , 2*wo + b]
    p01 = pe_ref[1]
    p10 = po_ref[0]          # (tho, Wo+1, C)   x_pad[2*ho + 1, 2*wo + b]
    p11 = po_ref[1]

    # Row-shifted even phases for the kh=2 taps: rows ho+1 (last one = halo).
    if tho == 1:
        s00 = peh_ref[0]
        s01 = peh_ref[1]
    else:
        s00 = jnp.concatenate([p00[1:], peh_ref[0]], axis=0)   # (tho, Wo+1, C)
        s01 = jnp.concatenate([p01[1:], peh_ref[1]], axis=0)

    # (patch, tap index t = kh*3 + kw) — all contiguous column slices.
    taps = (
        (p00[:, :Wo], 0), (p01[:, :Wo], 1), (p00[:, 1:], 2),   # kh = 0
        (p10[:, :Wo], 3), (p11[:, :Wo], 4), (p10[:, 1:], 5),   # kh = 1
        (s00[:, :Wo], 6), (s01[:, :Wo], 7), (s00[:, 1:], 8),   # kh = 2
    )

    acc = jnp.zeros((tho * Wo, tco), jnp.float32)
    for patch, t in taps:
        acc = acc + jnp.dot(patch.reshape(tho * Wo, C), w_ref[t],
                            preferred_element_type=jnp.float32)

    out = acc + b_ref[...]          # f32 bias, added exactly once per block
    o_ref[...] = out.reshape(tho, Wo, tco).astype(o_ref.dtype)


def _conv_downsample_phases(ph, w_taps, bias_f32, out_dtype, row_tile, co_tile):
    """ph: (N, 4, Ho+1, Wo+1, C) polyphase padded input; w_taps: (9, C, Co)."""
    N, _, Ho1, Wo1, C = ph.shape
    Ho, Wo = Ho1 - 1, Wo1 - 1
    Co = w_taps.shape[-1]
    tho, tco = row_tile, co_tile

    return pl.pallas_call(
        _conv3x3s2_kernel,
        out_shape=jax.ShapeDtypeStruct((N, Ho, Wo, Co), out_dtype),
        grid=(N, Ho // tho, Co // tco),
        in_specs=[
            # Even-row phases [P00, P01], output rows [tho*r, tho*(r+1)).
            pl.BlockSpec((None, 2, tho, Wo1, C), lambda n, r, c: (n, 0, r, 0, 0)),
            # Even-row phases, single halo row at output row tho*(r+1).
            pl.BlockSpec((None, 2, 1, Wo1, C),
                         lambda n, r, c: (n, 0, tho * (r + 1), 0, 0)),
            # Odd-row phases [P10, P11] for the same output rows.
            pl.BlockSpec((None, 2, tho, Wo1, C), lambda n, r, c: (n, 1, r, 0, 0)),
            # Weight taps and bias, tiled along Co only.
            pl.BlockSpec((9, C, tco), lambda n, r, c: (0, 0, c)),
            pl.BlockSpec((1, tco), lambda n, r, c: (0, c)),
        ],
        out_specs=pl.BlockSpec((None, tho, Wo, tco), lambda n, r, c: (n, r, 0, c)),
        compiler_params=pltpu.CompilerParams(
            dimension_semantics=("parallel", "parallel", "parallel")),
    )(ph, ph, ph, w_taps, bias_f32)


# ---------------------------------------------------------------------------
# AvgPool2d(2, 2) — tiny fused VPU kernel (no matmul)
# ---------------------------------------------------------------------------
def _avgpool2x2_kernel(x_ref, o_ref):
    # x_ref: (2*tho, W, C)   o_ref: (tho, Wo, C)
    tho, Wo, C = o_ref.shape
    acc = jnp.zeros((tho, Wo, C), jnp.float32)
    for kw in range(2):
        cols = x_ref[:, pl.ds(kw, Wo, 2), :].astype(jnp.float32)  # (2*tho, Wo, C)
        cols = cols.reshape(tho, 2, Wo, C)
        acc = acc + cols[:, 0] + cols[:, 1]
    o_ref[...] = (acc * 0.25).astype(o_ref.dtype)


def _avgpool_downsample_nhwc(x, row_tile):
    N, H, W, C = x.shape
    Ho, Wo = H // 2, W // 2
    tho = row_tile
    return pl.pallas_call(
        _avgpool2x2_kernel,
        out_shape=jax.ShapeDtypeStruct((N, Ho, Wo, C), x.dtype),
        grid=(N, Ho // tho),
        in_specs=[pl.BlockSpec((None, 2 * tho, W, C), lambda n, r: (n, r, 0, 0))],
        out_specs=pl.BlockSpec((None, tho, Wo, C), lambda n, r: (n, r, 0, 0)),
        compiler_params=pltpu.CompilerParams(
            dimension_semantics=("parallel", "parallel")),
    )(x)


# ---------------------------------------------------------------------------
# Tile-size heuristics (keep double-buffered blocks well under scoped VMEM)
# ---------------------------------------------------------------------------
def _largest_divisor_at_most(n, cap):
    cap = int(max(1, min(n, cap)))
    for d in range(cap, 0, -1):
        if n % d == 0:
            return d
    return 1


def _pick_conv_tiles(Ho, Wo, Wp, C, Co, in_itemsize, out_itemsize,
                     band_budget=4 << 20, weight_budget=4 << 20):
    # Co tile: full Co if the (9, C, Co) weight block is small, otherwise the
    # largest lane-dense (multiple-of-128) divisor that fits the budget.
    if Co <= 128 or 9 * C * Co * in_itemsize <= weight_budget:
        tco = Co
    else:
        cap = max(128, (weight_budget // (9 * C * in_itemsize)) // 128 * 128)
        tco = Co
        for d in range(int(cap), 0, -128):
            if Co % d == 0:
                tco = d
                break
    # Row tile: bound the double-buffered phase bands + accumulator/output.
    per_row = (2 * Wp * C * in_itemsize) * 2 + Wo * tco * (4 + out_itemsize) * 2
    tho = _largest_divisor_at_most(Ho, max(1, band_budget // max(per_row, 1)))
    return tho, tco


def _pick_pool_tile(Ho, W, C, itemsize, budget=4 << 20):
    per_row = 2 * W * C * itemsize * 2 + (W // 2) * C * (itemsize + 4) * 2
    return _largest_divisor_at_most(Ho, max(1, budget // max(per_row, 1)))


# ---------------------------------------------------------------------------
# Downsample forward (dims=2), NCHW public API matching the PyTorch module
# ---------------------------------------------------------------------------
def downsample2d(x_nchw, weight=None, bias=None, use_conv=True,
                 row_tile=None, compute_dtype=None):
    N, C, H, W = x_nchw.shape
    assert H % 2 == 0 and W % 2 == 0, "even spatial dims expected"
    Ho, Wo = H // 2, W // 2
    out_dtype = x_nchw.dtype

    # Layout glue (channels on lanes inside the kernel).
    x_nhwc = jnp.transpose(x_nchw, (0, 2, 3, 1))

    if use_conv:
        Co = weight.shape[0]
        cdt = jnp.dtype(compute_dtype) if compute_dtype is not None else jnp.dtype(out_dtype)
        # 1-pixel spatial halo + polyphase rearrangement (single XLA copy):
        #   ph[n, 2a+b, i, j, c] = x_pad[n, 2i+a, 2j+b, c]
        xp = jnp.pad(x_nhwc, ((0, 0), (1, 1), (1, 1), (0, 0))).astype(cdt)
        ph = xp.reshape(N, Ho + 1, 2, Wo + 1, 2, C).transpose(0, 2, 4, 1, 3, 5)
        ph = ph.reshape(N, 4, Ho + 1, Wo + 1, C)
        # (Co, Ci, kh, kw) -> (kh, kw, Ci, Co) -> (9, Ci, Co); tap t = kh*3+kw.
        w_taps = jnp.transpose(weight, (2, 3, 1, 0)).reshape(9, C, Co).astype(cdt)
        b_f32 = bias.reshape(1, Co).astype(jnp.float32)

        tho, tco = _pick_conv_tiles(Ho, Wo, W + 2, C, Co,
                                    cdt.itemsize, jnp.dtype(out_dtype).itemsize)
        if row_tile is not None:
            assert Ho % row_tile == 0, "row_tile must divide H//2"
            tho = row_tile
        out = _conv_downsample_phases(ph, w_taps, b_f32, out_dtype, tho, tco)
    else:
        assert weight is None and bias is None
        tho = _pick_pool_tile(Ho, W, C, jnp.dtype(out_dtype).itemsize)
        if row_tile is not None:
            assert Ho % row_tile == 0, "row_tile must divide H//2"
            tho = row_tile
        out = _avgpool_downsample_nhwc(x_nhwc, tho)

    return jnp.transpose(out, (0, 3, 1, 2))  # NHWC -> NCHW


# ---------------------------------------------------------------------------
# Demo / self-check
# ---------------------------------------------------------------------------
if __name__ == "__main__":
    key = jax.random.PRNGKey(0)
    kx, kw, kb = jax.random.split(key, 3)

    N, C, H, W = 2, 4, 16, 16
    C_out = C  # out_channels defaults to channels

    x = jax.random.normal(kx, (N, C, H, W), dtype=jnp.float32)

    # PyTorch-default-style init: U(-1/sqrt(fan_in), 1/sqrt(fan_in)).
    fan_in = C * 3 * 3
    bound = 1.0 / (fan_in ** 0.5)
    weight = jax.random.uniform(kw, (C_out, C, 3, 3), jnp.float32, -bound, bound)
    bias = jax.random.uniform(kb, (C_out,), jnp.float32, -bound, bound)

    # Reference: Conv2d(C, Co, 3, stride=2, padding=1).
    ref_conv = jax.lax.conv_general_dilated(
        x, weight, window_strides=(2, 2), padding=((1, 1), (1, 1)),
        dimension_numbers=("NCHW", "OIHW", "NCHW"),
    ) + bias.reshape(1, -1, 1, 1)

    # ---- use_conv=True, default row tiling ----
    y_conv = jax.block_until_ready(downsample2d(x, weight, bias, use_conv=True))
    assert y_conv.shape == (N, C_out, H // 2, W // 2)
    assert jnp.allclose(y_conv, ref_conv, atol=1e-4, rtol=1e-4)

    # ---- use_conv=True, forced small row tile (exercises multi-tile halo) ----
    y_conv_t = jax.block_until_ready(
        downsample2d(x, weight, bias, use_conv=True, row_tile=2))
    assert jnp.allclose(y_conv_t, ref_conv, atol=1e-4, rtol=1e-4)

    # ---- use_conv=False (AvgPool2d(2, 2)) ----
    y_pool = jax.block_until_ready(downsample2d(x, use_conv=False))
    ref_pool = x.reshape(N, C, H // 2, 2, W // 2, 2).mean(axis=(3, 5))
    assert y_pool.shape == (N, C, H // 2, W // 2)
    assert jnp.allclose(y_pool, ref_pool, atol=1e-5, rtol=1e-5)

    print("KERNEL_OK")
</pallas_src>

<mosaic_0001>
module attributes {stable_mosaic.version = 11 : i64} {
  func.func @_conv3x3s2_kernel(%arg0: i32, %arg1: i32, %arg2: i32, %arg3: memref<1x2x8x9x4xf32, #tpu.memory_space<vmem>>, %arg4: memref<1x2x1x9x4xf32, #tpu.memory_space<vmem>>, %arg5: memref<1x2x8x9x4xf32, #tpu.memory_space<vmem>>, %arg6: memref<9x4x4xf32, #tpu.memory_space<vmem>>, %arg7: memref<1x4xf32, #tpu.memory_space<vmem>>, %arg8: memref<1x8x8x4xf32, #tpu.memory_space<vmem>>) attributes {dimension_semantics = [#tpu.dimension_semantics<parallel>, #tpu.dimension_semantics<parallel>, #tpu.dimension_semantics<parallel>], iteration_bounds = array<i64: 2, 1, 1>, scalar_prefetch = 0 : i64, scratch_operands = 0 : i64, tpu.core_type = #tpu.core_type<tc>, window_params = [{transform_indices = @transform_0, window_bounds = array<i64: 1, 2, 8, 9, 4>}, {transform_indices = @transform_1, window_bounds = array<i64: 1, 2, 1, 9, 4>}, {transform_indices = @transform_2, window_bounds = array<i64: 1, 2, 8, 9, 4>}, {transform_indices = @transform_3, window_bounds = array<i64: 9, 4, 4>}, {transform_indices = @transform_4, window_bounds = array<i64: 1, 4>}, {transform_indices = @transform_5, window_bounds = array<i64: 1, 8, 8, 4>}]} {
    %c0 = arith.constant 0 : index
    %c0_0 = arith.constant 0 : index
    %c0_1 = arith.constant 0 : index
    %c0_2 = arith.constant 0 : index
    %c0_3 = arith.constant 0 : index
    %0 = vector.load %arg3[%c0, %c0_0, %c0_1, %c0_2, %c0_3] : memref<1x2x8x9x4xf32, #tpu.memory_space<vmem>>, vector<1x1x8x9x4xf32>
    %1 = vector.shape_cast %0 : vector<1x1x8x9x4xf32> to vector<8x9x4xf32>
    %c0_4 = arith.constant 0 : index
    %c1 = arith.constant 1 : index
    %c0_5 = arith.constant 0 : index
    %c0_6 = arith.constant 0 : index
    %c0_7 = arith.constant 0 : index
    %2 = vector.load %arg3[%c0_4, %c1, %c0_5, %c0_6, %c0_7] : memref<1x2x8x9x4xf32, #tpu.memory_space<vmem>>, vector<1x1x8x9x4xf32>
    %3 = vector.shape_cast %2 : vector<1x1x8x9x4xf32> to vector<8x9x4xf32>
    %c0_8 = arith.constant 0 : index
    %c0_9 = arith.constant 0 : index
    %c0_10 = arith.constant 0 : index
    %c0_11 = arith.constant 0 : index
    %c0_12 = arith.constant 0 : index
    %4 = vector.load %arg5[%c0_8, %c0_9, %c0_10, %c0_11, %c0_12] : memref<1x2x8x9x4xf32, #tpu.memory_space<vmem>>, vector<1x1x8x9x4xf32>
    %5 = vector.shape_cast %4 : vector<1x1x8x9x4xf32> to vector<8x9x4xf32>
    %c0_13 = arith.constant 0 : index
    %c1_14 = arith.constant 1 : index
    %c0_15 = arith.constant 0 : index
    %c0_16 = arith.constant 0 : index
    %c0_17 = arith.constant 0 : index
    %6 = vector.load %arg5[%c0_13, %c1_14, %c0_15, %c0_16, %c0_17] : memref<1x2x8x9x4xf32, #tpu.memory_space<vmem>>, vector<1x1x8x9x4xf32>
    %7 = vector.shape_cast %6 : vector<1x1x8x9x4xf32> to vector<8x9x4xf32>
    %8 = vector.extract_strided_slice %1 {offsets = [1, 0, 0], sizes = [7, 9, 4], strides = [1, 1, 1]} : vector<8x9x4xf32> to vector<7x9x4xf32>
    %c0_18 = arith.constant 0 : index
    %c0_19 = arith.constant 0 : index
    %c0_20 = arith.constant 0 : index
    %c0_21 = arith.constant 0 : index
    %c0_22 = arith.constant 0 : index
    %9 = vector.load %arg4[%c0_18, %c0_19, %c0_20, %c0_21, %c0_22] : memref<1x2x1x9x4xf32, #tpu.memory_space<vmem>>, vector<1x1x1x9x4xf32>
    %10 = vector.shape_cast %9 : vector<1x1x1x9x4xf32> to vector<1x9x4xf32>
    %11 = tpu.concatenate %8, %10 in 0 : vector<7x9x4xf32>, vector<1x9x4xf32> -> vector<8x9x4xf32>
    %12 = vector.extract_strided_slice %3 {offsets = [1, 0, 0], sizes = [7, 9, 4], strides = [1, 1, 1]} : vector<8x9x4xf32> to vector<7x9x4xf32>
    %c0_23 = arith.constant 0 : index
    %c1_24 = arith.constant 1 : index
    %c0_25 = arith.constant 0 : index
    %c0_26 = arith.constant 0 : index
    %c0_27 = arith.constant 0 : index
    %13 = vector.load %arg4[%c0_23, %c1_24, %c0_25, %c0_26, %c0_27] : memref<1x2x1x9x4xf32, #tpu.memory_space<vmem>>, vector<1x1x1x9x4xf32>
    %14 = vector.shape_cast %13 : vector<1x1x1x9x4xf32> to vector<1x9x4xf32>
    %15 = tpu.concatenate %12, %14 in 0 : vector<7x9x4xf32>, vector<1x9x4xf32> -> vector<8x9x4xf32>
    %16 = vector.extract_strided_slice %1 {offsets = [0, 0, 0], sizes = [8, 8, 4], strides = [1, 1, 1]} : vector<8x9x4xf32> to vector<8x8x4xf32>
    %17 = vector.extract_strided_slice %3 {offsets = [0, 0, 0], sizes = [8, 8, 4], strides = [1, 1, 1]} : vector<8x9x4xf32> to vector<8x8x4xf32>
    %18 = vector.extract_strided_slice %1 {offsets = [0, 1, 0], sizes = [8, 8, 4], strides = [1, 1, 1]} : vector<8x9x4xf32> to vector<8x8x4xf32>
    %19 = vector.extract_strided_slice %5 {offsets = [0, 0, 0], sizes = [8, 8, 4], strides = [1, 1, 1]} : vector<8x9x4xf32> to vector<8x8x4xf32>
    %20 = vector.extract_strided_slice %7 {offsets = [0, 0, 0], sizes = [8, 8, 4], strides = [1, 1, 1]} : vector<8x9x4xf32> to vector<8x8x4xf32>
    %21 = vector.extract_strided_slice %5 {offsets = [0, 1, 0], sizes = [8, 8, 4], strides = [1, 1, 1]} : vector<8x9x4xf32> to vector<8x8x4xf32>
    %22 = vector.extract_strided_slice %11 {offsets = [0, 0, 0], sizes = [8, 8, 4], strides = [1, 1, 1]} : vector<8x9x4xf32> to vector<8x8x4xf32>
    %23 = vector.extract_strided_slice %15 {offsets = [0, 0, 0], sizes = [8, 8, 4], strides = [1, 1, 1]} : vector<8x9x4xf32> to vector<8x8x4xf32>
    %24 = vector.extract_strided_slice %11 {offsets = [0, 1, 0], sizes = [8, 8, 4], strides = [1, 1, 1]} : vector<8x9x4xf32> to vector<8x8x4xf32>
    %cst = arith.constant 0.000000e+00 : f32
    %25 = vector.broadcast %cst : f32 to vector<64x4xf32>
    %26 = vector.shape_cast %16 : vector<8x8x4xf32> to vector<64x4xf32>
    %c0_28 = arith.constant 0 : index
    %c0_29 = arith.constant 0 : index
    %c0_30 = arith.constant 0 : index
    %27 = vector.load %arg6[%c0_28, %c0_29, %c0_30] : memref<9x4x4xf32, #tpu.memory_space<vmem>>, vector<1x4x4xf32>
    %28 = vector.shape_cast %27 : vector<1x4x4xf32> to vector<4x4xf32>
    %cst_31 = arith.constant dense<0.000000e+00> : vector<64x4xf32>
    %29 = tpu.matmul %26, %28, %cst_31 {dimension_numbers = #tpu.dot_dimension_numbers<[1], [0], [0], [1], [0, 0, 1, 1], [], []>} : vector<64x4xf32>, vector<4x4xf32>, vector<64x4xf32> -> vector<64x4xf32>
    %30 = arith.addf %25, %29 : vector<64x4xf32>
    %31 = vector.shape_cast %17 : vector<8x8x4xf32> to vector<64x4xf32>
    %c1_32 = arith.constant 1 : index
    %c0_33 = arith.constant 0 : index
    %c0_34 = arith.constant 0 : index
    %32 = vector.load %arg6[%c1_32, %c0_33, %c0_34] : memref<9x4x4xf32, #tpu.memory_space<vmem>>, vector<1x4x4xf32>
    %33 = vector.shape_cast %32 : vector<1x4x4xf32> to vector<4x4xf32>
    %cst_35 = arith.constant dense<0.000000e+00> : vector<64x4xf32>
    %34 = tpu.matmul %31, %33, %cst_35 {dimension_numbers = #tpu.dot_dimension_numbers<[1], [0], [0], [1], [0, 0, 1, 1], [], []>} : vector<64x4xf32>, vector<4x4xf32>, vector<64x4xf32> -> vector<64x4xf32>
    %35 = arith.addf %30, %34 : vector<64x4xf32>
    %36 = vector.shape_cast %18 : vector<8x8x4xf32> to vector<64x4xf32>
    %c2 = arith.constant 2 : index
    %c0_36 = arith.constant 0 : index
    %c0_37 = arith.constant 0 : index
    %37 = vector.load %arg6[%c2, %c0_36, %c0_37] : memref<9x4x4xf32, #tpu.memory_space<vmem>>, vector<1x4x4xf32>
    %38 = vector.shape_cast %37 : vector<1x4x4xf32> to vector<4x4xf32>
    %cst_38 = arith.constant dense<0.000000e+00> : vector<64x4xf32>
    %39 = tpu.matmul %36, %38, %cst_38 {dimension_numbers = #tpu.dot_dimension_numbers<[1], [0], [0], [1], [0, 0, 1, 1], [], []>} : vector<64x4xf32>, vector<4x4xf32>, vector<64x4xf32> -> vector<64x4xf32>
    %40 = arith.addf %35, %39 : vector<64x4xf32>
    %41 = vector.shape_cast %19 : vector<8x8x4xf32> to vector<64x4xf32>
    %c3 = arith.constant 3 : index
    %c0_39 = arith.constant 0 : index
    %c0_40 = arith.constant 0 : index
    %42 = vector.load %arg6[%c3, %c0_39, %c0_40] : memref<9x4x4xf32, #tpu.memory_space<vmem>>, vector<1x4x4xf32>
    %43 = vector.shape_cast %42 : vector<1x4x4xf32> to vector<4x4xf32>
    %cst_41 = arith.constant dense<0.000000e+00> : vector<64x4xf32>
    %44 = tpu.matmul %41, %43, %cst_41 {dimension_numbers = #tpu.dot_dimension_numbers<[1], [0], [0], [1], [0, 0, 1, 1], [], []>} : vector<64x4xf32>, vector<4x4xf32>, vector<64x4xf32> -> vector<64x4xf32>
    %45 = arith.addf %40, %44 : vector<64x4xf32>
    %46 = vector.shape_cast %20 : vector<8x8x4xf32> to vector<64x4xf32>
    %c4 = arith.constant 4 : index
    %c0_42 = arith.constant 0 : index
    %c0_43 = arith.constant 0 : index
    %47 = vector.load %arg6[%c4, %c0_42, %c0_43] : memref<9x4x4xf32, #tpu.memory_space<vmem>>, vector<1x4x4xf32>
    %48 = vector.shape_cast %47 : vector<1x4x4xf32> to vector<4x4xf32>
    %cst_44 = arith.constant dense<0.000000e+00> : vector<64x4xf32>
    %49 = tpu.matmul %46, %48, %cst_44 {dimension_numbers = #tpu.dot_dimension_numbers<[1], [0], [0], [1], [0, 0, 1, 1], [], []>} : vector<64x4xf32>, vector<4x4xf32>, vector<64x4xf32> -> vector<64x4xf32>
    %50 = arith.addf %45, %49 : vector<64x4xf32>
    %51 = vector.shape_cast %21 : vector<8x8x4xf32> to vector<64x4xf32>
    %c5 = arith.constant 5 : index
    %c0_45 = arith.constant 0 : index
    %c0_46 = arith.constant 0 : index
    %52 = vector.load %arg6[%c5, %c0_45, %c0_46] : memref<9x4x4xf32, #tpu.memory_space<vmem>>, vector<1x4x4xf32>
    %53 = vector.shape_cast %52 : vector<1x4x4xf32> to vector<4x4xf32>
    %cst_47 = arith.constant dense<0.000000e+00> : vector<64x4xf32>
    %54 = tpu.matmul %51, %53, %cst_47 {dimension_numbers = #tpu.dot_dimension_numbers<[1], [0], [0], [1], [0, 0, 1, 1], [], []>} : vector<64x4xf32>, vector<4x4xf32>, vector<64x4xf32> -> vector<64x4xf32>
    %55 = arith.addf %50, %54 : vector<64x4xf32>
    %56 = vector.shape_cast %22 : vector<8x8x4xf32> to vector<64x4xf32>
    %c6 = arith.constant 6 : index
    %c0_48 = arith.constant 0 : index
    %c0_49 = arith.constant 0 : index
    %57 = vector.load %arg6[%c6, %c0_48, %c0_49] : memref<9x4x4xf32, #tpu.memory_space<vmem>>, vector<1x4x4xf32>
    %58 = vector.shape_cast %57 : vector<1x4x4xf32> to vector<4x4xf32>
    %cst_50 = arith.constant dense<0.000000e+00> : vector<64x4xf32>
    %59 = tpu.matmul %56, %58, %cst_50 {dimension_numbers = #tpu.dot_dimension_numbers<[1], [0], [0], [1], [0, 0, 1, 1], [], []>} : vector<64x4xf32>, vector<4x4xf32>, vector<64x4xf32> -> vector<64x4xf32>
    %60 = arith.addf %55, %59 : vector<64x4xf32>
    %61 = vector.shape_cast %23 : vector<8x8x4xf32> to vector<64x4xf32>
    %c7 = arith.constant 7 : index
    %c0_51 = arith.constant 0 : index
    %c0_52 = arith.constant 0 : index
    %62 = vector.load %arg6[%c7, %c0_51, %c0_52] : memref<9x4x4xf32, #tpu.memory_space<vmem>>, vector<1x4x4xf32>
    %63 = vector.shape_cast %62 : vector<1x4x4xf32> to vector<4x4xf32>
    %cst_53 = arith.constant dense<0.000000e+00> : vector<64x4xf32>
    %64 = tpu.matmul %61, %63, %cst_53 {dimension_numbers = #tpu.dot_dimension_numbers<[1], [0], [0], [1], [0, 0, 1, 1], [], []>} : vector<64x4xf32>, vector<4x4xf32>, vector<64x4xf32> -> vector<64x4xf32>
    %65 = arith.addf %60, %64 : vector<64x4xf32>
    %66 = vector.shape_cast %24 : vector<8x8x4xf32> to vector<64x4xf32>
    %c8 = arith.constant 8 : index
    %c0_54 = arith.constant 0 : index
    %c0_55 = arith.constant 0 : index
    %67 = vector.load %arg6[%c8, %c0_54, %c0_55] : memref<9x4x4xf32, #tpu.memory_space<vmem>>, vector<1x4x4xf32>
    %68 = vector.shape_cast %67 : vector<1x4x4xf32> to vector<4x4xf32>
    %cst_56 = arith.constant dense<0.000000e+00> : vector<64x4xf32>
    %69 = tpu.matmul %66, %68, %cst_56 {dimension_numbers = #tpu.dot_dimension_numbers<[1], [0], [0], [1], [0, 0, 1, 1], [], []>} : vector<64x4xf32>, vector<4x4xf32>, vector<64x4xf32> -> vector<64x4xf32>
    %70 = arith.addf %65, %69 : vector<64x4xf32>
    %c0_57 = arith.constant 0 : index
    %c0_58 = arith.constant 0 : index
    %71 = vector.load %arg7[%c0_57, %c0_58] : memref<1x4xf32, #tpu.memory_space<vmem>>, vector<1x4xf32>
    %72 = vector.broadcast %71 : vector<1x4xf32> to vector<64x4xf32>
    %73 = arith.addf %70, %72 : vector<64x4xf32>
    %74 = vector.shape_cast %73 : vector<64x4xf32> to vector<8x8x4xf32>
    %c0_59 = arith.constant 0 : index
    %c0_60 = arith.constant 0 : index
    %c0_61 = arith.constant 0 : index
    %c0_62 = arith.constant 0 : index
    %75 = vector.load %arg8[%c0_59, %c0_60, %c0_61, %c0_62] : memref<1x8x8x4xf32, #tpu.memory_space<vmem>>, vector<1x8x8x4xf32>
    %76 = vector.shape_cast %75 : vector<1x8x8x4xf32> to vector<8x8x4xf32>
    %77 = vector.shape_cast %74 : vector<8x8x4xf32> to vector<1x8x8x4xf32>
    tpu.vector_store %arg8[%c0_59, %c0_60, %c0_61, %c0_62], %77 {strides = array<i32>} : memref<1x8x8x4xf32, #tpu.memory_space<vmem>>, vector<1x8x8x4xf32>,
    return
  }
  func.func @transform_0(%arg0: i32, %arg1: i32, %arg2: i32) -> (i32, i32, i32, i32, i32) {
    %c0_i32 = arith.constant 0 : i32
    %c0_i32_0 = arith.constant 0 : i32
    %c0_i32_1 = arith.constant 0 : i32
    %c0_i32_2 = arith.constant 0 : i32
    return %arg0, %c0_i32, %arg1, %c0_i32_0, %c0_i32_1 : i32, i32, i32, i32, i32
  }
  func.func @transform_1(%arg0: i32, %arg1: i32, %arg2: i32) -> (i32, i32, i32, i32, i32) {
    %c1_i32 = arith.constant 1 : i32
    %0 = arith.addi %arg1, %c1_i32 : i32
    %c8_i32 = arith.constant 8 : i32
    %1 = arith.muli %c8_i32, %0 : i32
    %c0_i32 = arith.constant 0 : i32
    %c0_i32_0 = arith.constant 0 : i32
    %c0_i32_1 = arith.constant 0 : i32
    %c0_i32_2 = arith.constant 0 : i32
    return %arg0, %c0_i32, %1, %c0_i32_0, %c0_i32_1 : i32, i32, i32, i32, i32
  }
  func.func @transform_2(%arg0: i32, %arg1: i32, %arg2: i32) -> (i32, i32, i32, i32, i32) {
    %c1_i32 = arith.constant 1 : i32
    %c0_i32 = arith.constant 0 : i32
    %c0_i32_0 = arith.constant 0 : i32
    %c0_i32_1 = arith.constant 0 : i32
    return %arg0, %c1_i32, %arg1, %c0_i32, %c0_i32_0 : i32, i32, i32, i32, i32
  }
  func.func @transform_3(%arg0: i32, %arg1: i32, %arg2: i32) -> (i32, i32, i32) {
    %c0_i32 = arith.constant 0 : i32
    %c0_i32_0 = arith.constant 0 : i32
    %c0_i32_1 = arith.constant 0 : i32
    return %c0_i32, %c0_i32_0, %arg2 : i32, i32, i32
  }
  func.func @transform_4(%arg0: i32, %arg1: i32, %arg2: i32) -> (i32, i32) {
    %c0_i32 = arith.constant 0 : i32
    %c0_i32_0 = arith.constant 0 : i32
    return %c0_i32, %arg2 : i32, i32
  }
  func.func @transform_5(%arg0: i32, %arg1: i32, %arg2: i32) -> (i32, i32, i32, i32) {
    %c0_i32 = arith.constant 0 : i32
    %c0_i32_0 = arith.constant 0 : i32
    return %arg0, %arg1, %c0_i32, %arg2 : i32, i32, i32, i32
  }
}

</mosaic_0001>

<bundles_post_ra>
// kernel: tpu_custom_call.1
= control target key start
LH: loop header
LB: loop body
LE: loop exit
PB: predicated region body
PF: predicated region fallthrough
CT: control target
= control target key end

     0   :  { %s3080_s18 = smov 0   ;;  %s3082_s19 = smov 0   ;;  %s3655_s0 = inlined_call_operand.vmem [shape: f32[2,4,9,9,4], index: 0, kind: input, shape index: {}]   ;;  %s3656_s1 = inlined_call_operand.vmem [shape: f32[2,4,9,9,4], index: 1, kind: input, shape index: {}]   ;;  %s3657_s2 = inlined_call_operand.vmem [shape: f32[2,4,9,9,4], index: 2, kind: input, shape index: {}]   ;;  %s3658_s3 = inlined_call_operand.vmem [shape: f32[9,4,4], index: 3, kind: input, shape index: {}]   ;;  %s3659_s4 = inlined_call_operand.vmem [shape: f32[1,4], index: 4, kind: input, shape index: {}]   ;;  %s3660_s5 = inlined_call_operand.vmem [shape: f32[2,8,8,4], index: 5, kind: output, shape index: {}]  }
   0x1   :  { %s3084_s20 = smov 0   ;;  %s3086_s21 = smov 0  }
   0x2   :  { %s3088_s22 = smov 0  }
   0x3 LB: > { %s34_s23 = sadd.s32 1, %s3032_s21  ;;  %p50_p1 = scmp.ne.s32.totalorder %s3024_s19, %s3020_s18  ;;  %s3036_s22 = sphi %s3088_s22, %s15_s22   ;;  %s3032_s21 = sphi %s3086_s21, %s3667_s21   ;;  %s3028_s20 = sphi %s3084_s20, %s3666_s20   ;;  %s3024_s19 = sphi %s3082_s19, %s3665_s19   ;;  %s3020_s18 = sphi %s3080_s18, %s3664_s18  }
   0x4   : > { %p36_p0 = scmp.ge.s32.totalorder %s34_s23, 2  ;;  %p51_p2 = scmp.eq.s32.totalorder %s3036_s22, 0 }
   0x5   : > { %s43_s26 = sadd.s32 1, %s3024_s19  ;;  %p2507_p5 = scmp.ge.s32.totalorder %s3036_s22, 2 }
   0x6   : > { %s3669_s23 = smov (%p36_p0, %s34_s23), 0  ;;  %p3111_p3 = por %p51_p2, %p50_p1 }
   0x7   : > { %s38_s25 = ssub.s32 %s3032_s21, %s3669_s23  ;;  %231 = sbr.rel (%p2507_p5) target bundleno = 64 (0x40), region = 24 }
   0x8   : > { %p41_p4 = scmp.eq.s32.totalorder %s38_s25, 0 }
   0xa   : > { %s3119_s27 = scalar_select %p41_p4, %s3024_s19, %s43_s26  }
   0xc   : > { %234 = sbr.rel (!%p3111_p3) target bundleno = 34 (0x22), region = 28  ;;  %s236_s28 = sand.u32 (%p3111_p3), 1, %s3024_s19  }
   0xd   : > { %s2861_s29 = smul.u32 (%p3111_p3), 576, %s3032_s21  ;;  %s2508_s30 = sshll.u32 (%p3111_p3), %s236_s28, 8 }
   0xe   : > { %s3131_s9 = scalar_lea.vmem (%p3111_p3), [#allocation2], %s2508_s30   ;;  %s3133_s10 = smov (%p3111_p3), 0  }
   0xf   : > { %s3129_s8 = scalar_lea.vmem (%p3111_p3), %s3655_s0, %s2861_s29  }
  0x11 LB: >> { %v381_v0 = vld [vmem:[%s3129_s8] sm:$0xff]  ;;  %v383_v1 = vld [vmem:[%s3129_s8 + $0x8] sm:$0xff]  ;;  %v385_v2 = vld [vmem:[%s3129_s8 + $0x10] sm:$0xff]  ;;  %s375_s10 = sadd.s32 1, %s3040_s10   ;;  %s3040_s10 = sphi %s3133_s10, %s375_s10  }
  0x12   : >> { %382 = vst [vmem:[%s3131_s9] sm:$0xff] %v381_v0  ;;  %384 = vst [vmem:[%s3131_s9 + $0x8] sm:$0xff] %v383_v1  ;;  %v387_v3 = vld [vmem:[%s3129_s8 + $0x18] sm:$0xff]  ;;  %v389_v4 = vld [vmem:[%s3129_s8 + $0x20] sm:$0xff]  ;;  %p374_p6 = scmp.ge.s32.totalorder %s375_s10, 1 }
  0x13   : >> { %386 = vst [vmem:[%s3131_s9 + $0x10] sm:$0xff] %v385_v2  ;;  %v391_v5 = vld [vmem:[%s3129_s8 + $0x28] sm:$0xff]  ;;  %388 = vst [vmem:[%s3131_s9 + $0x18] sm:$0xff] %v387_v3  ;;  %v393_v6 = vld [vmem:[%s3129_s8 + $0x30] sm:$0xff] }
  0x14   : >> { %390 = vst [vmem:[%s3131_s9 + $0x20] sm:$0xff] %v389_v4  ;;  %392 = vst [vmem:[%s3131_s9 + $0x28] sm:$0xff] %v391_v5  ;;  %v395_v7 = vld [vmem:[%s3129_s8 + $0x38] sm:$0xff]  ;;  %v397_v8 = vld [vmem:[%s3129_s8 + $0x40] sm:$0xff] }
  0x15   : >> { %394 = vst [vmem:[%s3131_s9 + $0x30] sm:$0xff] %v393_v6  ;;  %396 = vst [vmem:[%s3131_s9 + $0x38] sm:$0xff] %v395_v7  ;;  %v399_v9 = vld [vmem:[%s3129_s8 + $0x48] sm:$0xff]  ;;  %v401_v10 = vld [vmem:[%s3129_s8 + $0x50] sm:$0xff] }
  0x16   : >> { %398 = vst [vmem:[%s3131_s9 + $0x40] sm:$0xff] %v397_v8  ;;  %v403_v11 = vld [vmem:[%s3129_s8 + $0x58] sm:$0xff]  ;;  %400 = vst [vmem:[%s3131_s9 + $0x48] sm:$0xff] %v399_v9  ;;  %v405_v12 = vld [vmem:[%s3129_s8 + $0x60] sm:$0xff] }
  0x17   : >> { %402 = vst [vmem:[%s3131_s9 + $0x50] sm:$0xff] %v401_v10  ;;  %404 = vst [vmem:[%s3131_s9 + $0x58] sm:$0xff] %v403_v11  ;;  %v407_v13 = vld [vmem:[%s3129_s8 + $0x68] sm:$0xff]  ;;  %v409_v14 = vld [vmem:[%s3129_s8 + $0x70] sm:$0xff] }
  0x18   : >> { %406 = vst [vmem:[%s3131_s9 + $0x60] sm:$0xff] %v405_v12  ;;  %408 = vst [vmem:[%s3131_s9 + $0x68] sm:$0xff] %v407_v13  ;;  %v411_v15 = vld [vmem:[%s3129_s8 + $0x78] sm:$0xff]  ;;  %v413_v16 = vld [vmem:[%s3129_s8 + $0x90] sm:$0xff] }
  0x19   : >> { %410 = vst [vmem:[%s3131_s9 + $0x70] sm:$0xff] %v409_v14  ;;  %v415_v17 = vld [vmem:[%s3129_s8 + $0x98] sm:$0xff]  ;;  %412 = vst [vmem:[%s3131_s9 + $0x78] sm:$0xff] %v411_v15  ;;  %v417_v18 = vld [vmem:[%s3129_s8 + $0xa0] sm:$0xff] }
  0x1a   : >> { %414 = vst [vmem:[%s3131_s9 + $0x80] sm:$0xff] %v413_v16  ;;  %416 = vst [vmem:[%s3131_s9 + $0x88] sm:$0xff] %v415_v17  ;;  %v419_v19 = vld [vmem:[%s3129_s8 + $0xa8] sm:$0xff]  ;;  %v421_v20 = vld [vmem:[%s3129_s8 + $0xb0] sm:$0xff] }
  0x1b   : >> { %418 = vst [vmem:[%s3131_s9 + $0x90] sm:$0xff] %v417_v18  ;;  %420 = vst [vmem:[%s3131_s9 + $0x98] sm:$0xff] %v419_v19  ;;  %v423_v21 = vld [vmem:[%s3129_s8 + $0xb8] sm:$0xff]  ;;  %v425_v22 = vld [vmem:[%s3129_s8 + $0xc0] sm:$0xff] }
  0x1c   : >> { %422 = vst [vmem:[%s3131_s9 + $0xa0] sm:$0xff] %v421_v20  ;;  %v427_v23 = vld [vmem:[%s3129_s8 + $0xc8] sm:$0xff]  ;;  %424 = vst [vmem:[%s3131_s9 + $0xa8] sm:$0xff] %v423_v21  ;;  %v429_v24 = vld [vmem:[%s3129_s8 + $0xd0] sm:$0xff] }
  0x1d   : >> { %426 = vst [vmem:[%s3131_s9 + $0xb0] sm:$0xff] %v425_v22  ;;  %428 = vst [vmem:[%s3131_s9 + $0xb8] sm:$0xff] %v427_v23  ;;  %v431_v25 = vld [vmem:[%s3129_s8 + $0xd8] sm:$0xff]  ;;  %v433_v26 = vld [vmem:[%s3129_s8 + $0xe0] sm:$0xff]  ;;  %377 = sbr.rel (!%p374_p6) target bundleno = 17 (0x11), region = 266 }
  0x1e   : >> { %430 = vst [vmem:[%s3131_s9 + $0xc0] sm:$0xff] %v429_v24  ;;  %432 = vst [vmem:[%s3131_s9 + $0xc8] sm:$0xff] %v431_v25  ;;  %v435_v27 = vld [vmem:[%s3129_s8 + $0xe8] sm:$0xff]  ;;  %v437_v28 = vld [vmem:[%s3129_s8 + $0xf0] sm:$0xff] }
  0x1f   : >> { %434 = vst [vmem:[%s3131_s9 + $0xd0] sm:$0xff] %v433_v26  ;;  %v439_v29 = vld [vmem:[%s3129_s8 + $0xf8] sm:$0xff]  ;;  %436 = vst [vmem:[%s3131_s9 + $0xd8] sm:$0xff] %v435_v27  ;;  %v441_v30 = vld [vmem:[%s3129_s8 + $0x100] sm:$0xff] }
  0x20   : >> { %438 = vst [vmem:[%s3131_s9 + $0xe0] sm:$0xff] %v437_v28  ;;  %440 = vst [vmem:[%s3131_s9 + $0xe8] sm:$0xff] %v439_v29  ;;  %v443_v31 = vld [vmem:[%s3129_s8 + $0x108] sm:$0xff] }
  0x21   : >> { %442 = vst [vmem:[%s3131_s9 + $0xf0] sm:$0xff] %v441_v30  ;;  %444 = vst [vmem:[%s3131_s9 + $0xf8] sm:$0xff] %v443_v31 }
  0x22 PF: > { %484 = sbr.rel (!%p3111_p3) target bundleno = 41 (0x29), region = 80  ;;  %s486_s11 = sand.u32 (%p3111_p3), 1, %s3024_s19  }
  0x23   : > { %s2519_s12 = smul.u32 (%p3111_p3), 576, %s3032_s21  ;;  %s2518_s13 = sshll.u32 (%p3111_p3), %s486_s11, 5 }
  0x24   : > { %s488_s17 = scalar_lea.vmem (%p3111_p3), [#allocation3], %s2518_s13 }
  0x25   : > { %s2302_s16 = scalar_lea.vmem (%p3111_p3), %s3656_s1, %s2519_s12 }
  0x26   : > { %v2520_v32 = vld [vmem:[%s2302_s16 + $0x80] sm:$0xff] (%p3111_p3)  ;;  %v2521_v33 = vld [vmem:[%s2302_s16 + $0x88] sm:$0xff] (%p3111_p3)  ;;  %v2522_v34 = vld [vmem:[%s2302_s16 + $0x110] sm:$0xff] (%p3111_p3) }
  0x27   : > { %531 = vst [vmem:[%s488_s17] sm:$0xff] %v2520_v32  ;;  %533 = vst [vmem:[%s488_s17 + $0x8] sm:$0xff] %v2521_v33  ;;  %v2523_v35 = vld [vmem:[%s2302_s16 + $0x118] sm:$0xff] }
  0x28   : > { %535 = vst [vmem:[%s488_s17 + $0x10] sm:$0xff] %v2522_v34  ;;  %537 = vst [vmem:[%s488_s17 + $0x18] sm:$0xff] %v2523_v35 }
  0x29 PF: > { %543 = sbr.rel (!%p3111_p3) target bundleno = 64 (0x40), region = 118  ;;  %s545_s25 = sand.u32 (%p3111_p3), 1, %s3024_s19  }
  0x2a   : > { %s2525_s26 = smul.u32 (%p3111_p3), 576, %s3032_s21  ;;  %s2524_s28 = sshll.u32 (%p3111_p3), %s545_s25, 8 }
  0x2b   : > { %s3222_s8 = scalar_lea.vmem (%p3111_p3), [#allocation4], %s2524_s28   ;;  %s3228_s24 = smov (%p3111_p3), 0  }
  0x2c   : > { %s3219_s6 = scalar_lea.vmem (%p3111_p3), %s3657_s2, %s2525_s26 }
  0x2d   : > { %s2311_s7 = scalar_lea.vmem (%p3111_p3), %s3219_s6, 288  }
  0x2e   : > { %s3662_s9 = smov %s2311_s7 }
  0x2f LB: >> { %v691_v36 = vld [vmem:[%s3044_s9] sm:$0xff]  ;;  %v693_v37 = vld [vmem:[%s3044_s9 + $0x8] sm:$0xff]  ;;  %v695_v38 = vld [vmem:[%s3044_s9 + $0x10] sm:$0xff]  ;;  %s685_s24 = sadd.s32 1, %s3048_s24   ;;  %s3048_s24 = sphi %s3228_s24, %s685_s24   ;;  %s3044_s9 = sphi %s3662_s9, %s3663_s9  }
  0x30   : >> { %692 = vst [vmem:[%s3222_s8] sm:$0xff] %v691_v36  ;;  %694 = vst [vmem:[%s3222_s8 + $0x8] sm:$0xff] %v693_v37  ;;  %v697_v39 = vld [vmem:[%s3044_s9 + $0x18] sm:$0xff]  ;;  %v699_v40 = vld [vmem:[%s3044_s9 + $0x20] sm:$0xff]  ;;  %p684_p7 = scmp.ge.s32.totalorder %s685_s24, 1 }
  0x31   : >> { %696 = vst [vmem:[%s3222_s8 + $0x10] sm:$0xff] %v695_v38  ;;  %v701_v41 = vld [vmem:[%s3044_s9 + $0x28] sm:$0xff]  ;;  %698 = vst [vmem:[%s3222_s8 + $0x18] sm:$0xff] %v697_v39  ;;  %v703_v42 = vld [vmem:[%s3044_s9 + $0x30] sm:$0xff] }
  0x32   : >> { %700 = vst [vmem:[%s3222_s8 + $0x20] sm:$0xff] %v699_v40  ;;  %702 = vst [vmem:[%s3222_s8 + $0x28] sm:$0xff] %v701_v41  ;;  %v705_v43 = vld [vmem:[%s3044_s9 + $0x38] sm:$0xff]  ;;  %v707_v44 = vld [vmem:[%s3044_s9 + $0x40] sm:$0xff] }
  0x33   : >> { %704 = vst [vmem:[%s3222_s8 + $0x30] sm:$0xff] %v703_v42  ;;  %706 = vst [vmem:[%s3222_s8 + $0x38] sm:$0xff] %v705_v43  ;;  %v709_v45 = vld [vmem:[%s3044_s9 + $0x48] sm:$0xff]  ;;  %v711_v46 = vld [vmem:[%s3044_s9 + $0x50] sm:$0xff] }
  0x34   : >> { %708 = vst [vmem:[%s3222_s8 + $0x40] sm:$0xff] %v707_v44  ;;  %v713_v47 = vld [vmem:[%s3044_s9 + $0x58] sm:$0xff]  ;;  %710 = vst [vmem:[%s3222_s8 + $0x48] sm:$0xff] %v709_v45  ;;  %v715_v48 = vld [vmem:[%s3044_s9 + $0x60] sm:$0xff] }
  0x35   : >> { %712 = vst [vmem:[%s3222_s8 + $0x50] sm:$0xff] %v711_v46  ;;  %714 = vst [vmem:[%s3222_s8 + $0x58] sm:$0xff] %v713_v47  ;;  %v717_v49 = vld [vmem:[%s3044_s9 + $0x68] sm:$0xff]  ;;  %v719_v50 = vld [vmem:[%s3044_s9 + $0x70] sm:$0xff] }
  0x36   : >> { %716 = vst [vmem:[%s3222_s8 + $0x60] sm:$0xff] %v715_v48  ;;  %718 = vst [vmem:[%s3222_s8 + $0x68] sm:$0xff] %v717_v49  ;;  %v721_v51 = vld [vmem:[%s3044_s9 + $0x78] sm:$0xff]  ;;  %v723_v52 = vld [vmem:[%s3044_s9 + $0x90] sm:$0xff] }
  0x37   : >> { %720 = vst [vmem:[%s3222_s8 + $0x70] sm:$0xff] %v719_v50  ;;  %v725_v53 = vld [vmem:[%s3044_s9 + $0x98] sm:$0xff]  ;;  %722 = vst [vmem:[%s3222_s8 + $0x78] sm:$0xff] %v721_v51  ;;  %v727_v54 = vld [vmem:[%s3044_s9 + $0xa0] sm:$0xff] }
  0x38   : >> { %724 = vst [vmem:[%s3222_s8 + $0x80] sm:$0xff] %v723_v52  ;;  %726 = vst [vmem:[%s3222_s8 + $0x88] sm:$0xff] %v725_v53  ;;  %v729_v55 = vld [vmem:[%s3044_s9 + $0xa8] sm:$0xff]  ;;  %v731_v56 = vld [vmem:[%s3044_s9 + $0xb0] sm:$0xff] }
  0x39   : >> { %728 = vst [vmem:[%s3222_s8 + $0x90] sm:$0xff] %v727_v54  ;;  %730 = vst [vmem:[%s3222_s8 + $0x98] sm:$0xff] %v729_v55  ;;  %v733_v57 = vld [vmem:[%s3044_s9 + $0xb8] sm:$0xff]  ;;  %v735_v58 = vld [vmem:[%s3044_s9 + $0xc0] sm:$0xff] }
  0x3a   : >> { %732 = vst [vmem:[%s3222_s8 + $0xa0] sm:$0xff] %v731_v56  ;;  %v737_v59 = vld [vmem:[%s3044_s9 + $0xc8] sm:$0xff]  ;;  %734 = vst [vmem:[%s3222_s8 + $0xa8] sm:$0xff] %v733_v57  ;;  %v739_v60 = vld [vmem:[%s3044_s9 + $0xd0] sm:$0xff] }
  0x3b   : >> { %736 = vst [vmem:[%s3222_s8 + $0xb0] sm:$0xff] %v735_v58  ;;  %738 = vst [vmem:[%s3222_s8 + $0xb8] sm:$0xff] %v737_v59  ;;  %v741_v61 = vld [vmem:[%s3044_s9 + $0xd8] sm:$0xff]  ;;  %v743_v62 = vld [vmem:[%s3044_s9 + $0xe0] sm:$0xff]  ;;  %687 = sbr.rel (!%p684_p7) target bundleno = 47 (0x2f), region = 288 }
  0x3c   : >> { %740 = vst [vmem:[%s3222_s8 + $0xc0] sm:$0xff] %v739_v60  ;;  %742 = vst [vmem:[%s3222_s8 + $0xc8] sm:$0xff] %v741_v61  ;;  %v745_v63 = vld [vmem:[%s3044_s9 + $0xe8] sm:$0xff]  ;;  %v747_v0 = vld [vmem:[%s3044_s9 + $0xf0] sm:$0xff] }
  0x3d   : >> { %744 = vst [vmem:[%s3222_s8 + $0xd0] sm:$0xff] %v743_v62  ;;  %v749_v1 = vld [vmem:[%s3044_s9 + $0xf8] sm:$0xff]  ;;  %746 = vst [vmem:[%s3222_s8 + $0xd8] sm:$0xff] %v745_v63  ;;  %v751_v2 = vld [vmem:[%s3044_s9 + $0x100] sm:$0xff] }
  0x3e   : >> { %748 = vst [vmem:[%s3222_s8 + $0xe0] sm:$0xff] %v747_v0  ;;  %750 = vst [vmem:[%s3222_s8 + $0xe8] sm:$0xff] %v749_v1  ;;  %v753_v3 = vld [vmem:[%s3044_s9 + $0x108] sm:$0xff]  ;;  %s3663_s9 = smov %s2311_s7 }
  0x3f   : >> { %752 = vst [vmem:[%s3222_s8 + $0xf0] sm:$0xff] %v751_v2  ;;  %754 = vst [vmem:[%s3222_s8 + $0xf8] sm:$0xff] %v753_v3 }
  0x40 PF: > { %p2536_p8 = scmp.ge.s32.totalorder %s3036_s22, 1  ;;  %p793_p9 = scmp.lt.s32.totalorder %s3036_s22, 3 }
  0x42   : > { %p794_p10 = pnand %p2536_p8, %p793_p9 }
  0x43   : > { %s800_s12 = sand.u32 (!%p794_p10), 1, %s3020_s18   ;;  %p885_p11 = scmp.lt.s32.totalorder (!%p794_p10), %s3028_s20, 1 }
  0x44   : > { %797 = sbr.rel (%p794_p10) target bundleno = 348 (0x15c), region = 170  ;;  %s3317_s13 = sshll.u32 (!%p794_p10), %s800_s12, 8 }
  0x45   : > { %s3328_s25 = scalar_lea.vmem (!%p794_p10), [#allocation2], %s3317_s13  ;;  %s3475_s24 = scalar_lea.vmem (!%p794_p10), [#allocation4], %s3317_s13 }
  0x46   : > { %s2538_s15 = sshll.u32 (!%p794_p10), %s800_s12, 5 }
  0x47   : > { %s809_s18 = scalar_lea.vmem (!%p794_p10), [#allocation3], %s2538_s15 }
  0x49   : > { %v2559_v4 = vld [vmem:[%s3658_s3 + $0x4] sm:$0xf]  ;;  %vm979_vm0 = vcmask 1043456   ;;  %vm954_vm1 = vcmask 31744   ;;  %v951_v5 = vld [vmem:[%s3658_s3] sm:$0xf] }
  0x4a   : > { %2859 = vmatprep.subr.msk.mxu1 %vm979_vm0, %v2559_v4  ;;  %2733 = vmatprep.subr.msk.mxu0 %vm979_vm0, %v2559_v4  ;;  %v2578_v6 = vld [vmem:[%s3658_s3 + $0x8] sm:$0xf]  ;;  %v2542_v7 = vld [vmem:[%s3328_s25 + $0x80] sm:$0xff]  ;;  %v3336_v9 = vld [vmem:[%s3328_s25 + $0x90] sm:$0xff]  ;;  %vm1228_vm2 = vcmask 1046528   ;;  %s3671_s20 = smov (!%p885_p11, %s3028_s20), 1 }
  0x4b   : > { %2860 = vmatpush3.msk.msra.mxu1 %vm979_vm0, %v2559_v4  ;;  %2734 = vmatpush3.msk.msra.mxu0 %vm979_vm0, %v2559_v4  ;;  %v3332_v8 = vld [vmem:[%s3328_s25 + $0xc0] sm:$0xff]  ;;  %v2588_v10 = vld [vmem:[%s3658_s3 + $0xc] sm:$0xf]  ;;  %v2598_v11 = vld [vmem:[%s3658_s3 + $0x10] sm:$0xf]  ;;  %s2651_s12 = sshll.u32 %s3671_s20, 6 }
  0x4c   : > { %2747 = vmatprep.subr.msk.mxu1 %vm979_vm0, %v951_v5  ;;  %2761 = vmatprep.subr.msk.mxu0 %vm979_vm0, %v2578_v6  ;;  %v3349_v12 = vld [vmem:[%s3328_s25 + $0xd0] sm:$0xff]  ;;  %v3352_v13 = vld [vmem:[%s3328_s25 + $0xa0] sm:$0xff]  ;;  %v898_v19 = vld [vmem:[%s3328_s25 + $0x8] sm:$0x1]  ;;  %s3621_s28 = scalar_lea.vmem %s3660_s5, %s2651_s12 }
  0x4d   : > { %2735 = vmatprep.mubr.msk.f32.mxu0 %vm954_vm1, %v2542_v7  ;;  %2741 = vmatprep.mubr.msk.f32.mxu1 %vm954_vm1, %v3332_v8  ;;  %v3355_v14 = vld [vmem:[%s3328_s25 + $0xe0] sm:$0xff]  ;;  %v3362_v15 = vld [vmem:[%s3328_s25 + $0xb0] sm:$0xff]  ;;  %v900_v21 = vld [vmem:[%s3328_s25 + $0x18] sm:$0x1]  ;;  %v1230_v22 = vrot.slane %v898_v19, 1 }
  0x4e   : > { %2736 = vmatmul.mubr.msk.f32.vlgmr.msra.gmra.mxu0 %vm954_vm1, %v3336_v9  ;;  %2742 = vmatmul.mubr.msk.f32.vlgmr.msra.gmra.mxu1 %vm954_vm1, %v3349_v12  ;;  %v3365_v16 = vld [vmem:[%s3328_s25 + $0xf0] sm:$0xff]  ;;  %v897_v17 = vld [vmem:[%s3328_s25] sm:$0xff]  ;;  %v1233_v24 = vrot.slane %v900_v21, 1  ;;  %v902_v26 = vld [vmem:[%s3328_s25 + $0x28] sm:$0x1] }
  0x4f   : > { %2748 = vmatpush3.msk.msra.mxu1 %vm979_vm0, %v951_v5  ;;  %2762 = vmatpush3.msk.msra.mxu0 %vm979_vm0, %v2578_v6  ;;  %v1229_v18 = vrot.slane %v897_v17, 1  ;;  %v3372_v20 = vld [vmem:[%s3328_s25 + $0x10] sm:$0xff]  ;;  %v3381_v25 = vld [vmem:[%s3328_s25 + $0x20] sm:$0xff]  ;;  %v1236_v28 = vrot.slane %v902_v26, 1  ;;  %v904_v30 = vld [vmem:[%s3328_s25 + $0x38] sm:$0x1] }
  0x50   : > { %2738 = vmatprep.mubr.msk.f32.mxu0 %vm954_vm1, %v3352_v13  ;;  %2744 = vmatprep.mubr.msk.f32.mxu1 %vm954_vm1, %v3355_v14  ;;  %v1232_v23 = vrot.slane %v3372_v20, 1  ;;  %v1235_v27 = vrot.slane %v3381_v25, 1  ;;  %v3388_v29 = vld [vmem:[%s3328_s25 + $0x30] sm:$0xff]  ;;  %v3392_v31 = vld [vmem:[%s3328_s25 + $0x40] sm:$0xff]  ;;  %v906_v33 = vld [vmem:[%s3328_s25 + $0x48] sm:$0x1] }
  0x51   : > { %2775 = vmatprep.subr.msk.mxu1 %vm979_vm0, %v2588_v10  ;;  %2789 = vmatprep.subr.msk.mxu0 %vm979_vm0, %v2598_v11  ;;  %v1231_v32 = vsel %vm1228_vm2, %v1229_v18, %v1230_v22  ;;  %v1238_v35 = vrot.slane %v3388_v29, 1  ;;  %v1239_v36 = vrot.slane %v904_v30, 1  ;;  %v1241_v37 = vrot.slane %v3392_v31, 1  ;;  %v3408_v39 = vld [vmem:[%s3328_s25 + $0x50] sm:$0xff]  ;;  %v908_v40 = vld [vmem:[%s3328_s25 + $0x58] sm:$0x1] }
  0x52   : > { %2739 = vmatmul.mubr.msk.f32.gmra.mxu0 %vm954_vm1, %v3362_v15  ;;  %2745 = vmatmul.mubr.msk.f32.gmra.mxu1 %vm954_vm1, %v3365_v16  ;;  %v3403_v34 = vsel %vm1228_vm2, %v1232_v23, %v1233_v24  ;;  %v1242_v38 = vrot.slane %v906_v33, 1  ;;  %v3412_v41 = vsel %vm1228_vm2, %v1235_v27, %v1236_v28  ;;  %v3415_v42 = vld [vmem:[%s3328_s25 + $0x60] sm:$0xff]  ;;  %v910_v43 = vld [vmem:[%s3328_s25 + $0x68] sm:$0x1]  ;;  %v2608_v44 = vld [vmem:[%s3658_s3 + $0x14] sm:$0xf] }
  0x53   : > { %2749 = vmatprep.mubr.msk.f32.mxu1 %vm954_vm1, %v897_v17  ;;  %2763 = vmatprep.mubr.msk.f32.mxu0 %vm954_vm1, %v1231_v32  ;;  %v3428_v45 = vsel %vm1228_vm2, %v1238_v35, %v1239_v36  ;;  %v1244_v46 = vrot.slane %v3408_v39, 1  ;;  %v1245_v47 = vrot.slane %v908_v40, 1  ;;  %v2618_v48 = vld [vmem:[%s3658_s3 + $0x18] sm:$0xf]  ;;  %v1247_v50 = vrot.slane %v3415_v42, 1  ;;  %v3443_v52 = vld [vmem:[%s3328_s25 + $0x70] sm:$0xff] }
  0x54   : > { %v3439_v49 = vsel %vm1228_vm2, %v1241_v37, %v1242_v38  ;;  %v1248_v51 = vrot.slane %v910_v43, 1  ;;  %v912_v53 = vld [vmem:[%s3328_s25 + $0x78] sm:$0x1]  ;;  %v1250_v55 = vrot.slane %v3443_v52, 1  ;;  %v922_v59 = vld [vmem:[%s3475_s24] sm:$0xff]  ;;  %v924_v61 = vld [vmem:[%s3475_s24 + $0x10] sm:$0xff] }
  0x55   : > { %v3457_v54 = vsel %vm1228_vm2, %v1244_v46, %v1245_v47  ;;  %v1251_v56 = vrot.slane %v912_v53, 1  ;;  %v2550_v60 = vld [vmem:[%s3475_s24 + $0x80] sm:$0xff]  ;;  %v2551_v62 = vld [vmem:[%s3475_s24 + $0x90] sm:$0xff]  ;;  %v2628_v1 = vld [vmem:[%s3658_s3 + $0x1c] sm:$0xf]  ;;  %v1679_v17 = vrot.slane %v922_v59, 1 }
  0x56   : > { %2750 = vmatmul.mubr.msk.f32.vlgmr.msra.gmra.mxu1 %vm954_vm1, %v3372_v20  ;;  %2764 = vmatmul.mubr.msk.f32.vlgmr.msra.gmra.mxu0 %vm954_vm1, %v3403_v34  ;;  %v3461_v57 = vsel %vm1228_vm2, %v1247_v50, %v1248_v51  ;;  %v926_v63 = vld [vmem:[%s3475_s24 + $0x20] sm:$0xff]  ;;  %v928_v3 = vld [vmem:[%s3475_s24 + $0x30] sm:$0xff]  ;;  %v923_v7 = vld [vmem:[%s3475_s24 + $0x8] sm:$0x1]  ;;  %v1682_v24 = vrot.slane %v924_v61, 1 }
  0x57   : > { %2776 = vmatpush3.msk.msra.mxu1 %vm979_vm0, %v2588_v10  ;;  %2790 = vmatpush3.msk.msra.mxu0 %vm979_vm0, %v2598_v11  ;;  %v3472_v58 = vsel %vm1228_vm2, %v1250_v55, %v1251_v56  ;;  %v2552_v0 = vld [vmem:[%s3475_s24 + $0xa0] sm:$0xff]  ;;  %v2553_v4 = vld [vmem:[%s3475_s24 + $0xb0] sm:$0xff]  ;;  %v1680_v21 = vrot.slane %v923_v7, 1  ;;  %v925_v22 = vld [vmem:[%s3475_s24 + $0x18] sm:$0x1]  ;;  %v1685_v33 = vrot.slane %v926_v63, 1 }
  0x58   : > { %2752 = vmatprep.mubr.msk.f32.mxu1 %vm954_vm1, %v3381_v25  ;;  %2766 = vmatprep.mubr.msk.f32.mxu0 %vm954_vm1, %v3412_v41  ;;  %v2638_v2 = vld [vmem:[%s3658_s3 + $0x20] sm:$0xf]  ;;  %v932_v10 = vld [vmem:[%s3475_s24 + $0x50] sm:$0xff]  ;;  %v927_v23 = vld [vmem:[%s3475_s24 + $0x28] sm:$0x1]  ;;  %v1683_v28 = vrot.slane %v925_v22, 1 }
  0x59   : > { %2803 = vmatprep.subr.msk.mxu1 %vm979_vm0, %v2608_v44  ;;  %2817 = vmatprep.subr.msk.mxu0 %vm979_vm0, %v2618_v48  ;;  %v930_v5 = vld [vmem:[%s3475_s24 + $0x40] sm:$0xff]  ;;  %v2555_v11 = vld [vmem:[%s3475_s24 + $0xd0] sm:$0xff]  ;;  %v1681_v30 = vsel %vm1228_vm2, %v1679_v17, %v1680_v21  ;;  %v929_v32 = vld [vmem:[%s3475_s24 + $0x38] sm:$0x1]  ;;  %v1686_v35 = vrot.slane %v927_v23, 1  ;;  %v1688_v37 = vrot.slane %v928_v3, 1 }
  0x5a   : > { %2753 = vmatmul.mubr.msk.f32.gmra.mxu1 %vm954_vm1, %v3388_v29  ;;  %2767 = vmatmul.mubr.msk.f32.gmra.mxu0 %vm954_vm1, %v3428_v45  ;;  %v2554_v6 = vld [vmem:[%s3475_s24 + $0xc0] sm:$0xff]  ;;  %v936_v26 = vld [vmem:[%s3475_s24 + $0x70] sm:$0xff]  ;;  %v931_v36 = vld [vmem:[%s3475_s24 + $0x48] sm:$0x1]  ;;  %v1684_v38 = vsel %vm1228_vm2, %v1682_v24, %v1683_v28  ;;  %v1689_v40 = vrot.slane %v929_v32, 1  ;;  %v1691_v43 = vrot.slane %v930_v5, 1 }
  0x5b   : > { %2755 = vmatprep.mubr.msk.f32.mxu1 %vm954_vm1, %v3392_v31  ;;  %2769 = vmatprep.mubr.msk.f32.mxu0 %vm954_vm1, %v3439_v49  ;;  %v934_v18 = vld [vmem:[%s3475_s24 + $0x60] sm:$0xff]  ;;  %v2557_v27 = vld [vmem:[%s3475_s24 + $0xf0] sm:$0xff]  ;;  %v933_v46 = vld [vmem:[%s3475_s24 + $0x58] sm:$0x1]  ;;  %v1687_v47 = vsel %vm1228_vm2, %v1685_v33, %v1686_v35  ;;  %v1694_v50 = vrot.slane %v932_v10, 1 }
  0x5c   : > { %v2556_v19 = vld [vmem:[%s3475_s24 + $0xe0] sm:$0xff]  ;;  %v1695_v51 = vrot.slane %v933_v46, 1  ;;  %v1697_v53 = vrot.slane %v934_v18, 1 }
  0x5e   : > { %2756 = vmatmul.mubr.msk.f32.gmra.mxu1 %vm954_vm1, %v3408_v39  ;;  %2770 = vmatmul.mubr.msk.f32.gmra.mxu0 %vm954_vm1, %v3457_v54 }
  0x5f   : > { %2758 = vmatprep.mubr.msk.f32.mxu1 %vm954_vm1, %v3415_v42  ;;  %2772 = vmatprep.mubr.msk.f32.mxu0 %vm954_vm1, %v3461_v57 }
  0x62   : > { %2759 = vmatmul.mubr.msk.f32.gmra.mxu1 %vm954_vm1, %v3443_v52  ;;  %2773 = vmatmul.mubr.msk.f32.gmra.mxu0 %vm954_vm1, %v3472_v58 }
  0x63   : > { %2777 = vmatprep.mubr.msk.f32.mxu1 %vm954_vm1, %v922_v59  ;;  %2791 = vmatprep.mubr.msk.f32.mxu0 %vm954_vm1, %v2550_v60  ;;  %v937_v59 = vld [vmem:[%s3475_s24 + $0x78] sm:$0x1]  ;;  %v1696_v60 = vsel %vm1228_vm2, %v1694_v50, %v1695_v51 }
  0x66   : > { %2778 = vmatmul.mubr.msk.f32.vlgmr.msra.gmra.mxu1 %vm954_vm1, %v924_v61  ;;  %2792 = vmatmul.mubr.msk.f32.vlgmr.msra.gmra.mxu0 %vm954_vm1, %v2551_v62  ;;  %v947_v62 = vld [vmem:[%s809_s18] sm:$0xff] }
  0x67   : > { %2804 = vmatpush3.msk.msra.mxu1 %vm979_vm0, %v2608_v44  ;;  %2818 = vmatpush3.msk.msra.mxu0 %vm979_vm0, %v2618_v48  ;;  %v1692_v44 = vrot.slane %v931_v36, 1  ;;  %v935_v48 = vld [vmem:[%s3475_s24 + $0x68] sm:$0x1] }
  0x68   : > { %2780 = vmatprep.mubr.msk.f32.mxu1 %vm954_vm1, %v926_v63  ;;  %2794 = vmatprep.mubr.msk.f32.mxu0 %vm954_vm1, %v2552_v0  ;;  %v1698_v56 = vrot.slane %v935_v48, 1 }
  0x69   : > { %2831 = vmatprep.subr.msk.mxu1 %vm979_vm0, %v2628_v1  ;;  %2845 = vmatprep.subr.msk.mxu0 %vm979_vm0, %v2638_v2  ;;  %v1693_v55 = vsel %vm1228_vm2, %v1691_v43, %v1692_v44 }
  0x6a   : > { %2781 = vmatmul.mubr.msk.f32.gmra.mxu1 %vm954_vm1, %v928_v3  ;;  %2795 = vmatmul.mubr.msk.f32.gmra.mxu0 %vm954_vm1, %v2553_v4  ;;  %v1699_v61 = vsel %vm1228_vm2, %v1697_v53, %v1698_v56 }
  0x6b   : > { %2783 = vmatprep.mubr.msk.f32.mxu1 %vm954_vm1, %v930_v5  ;;  %2797 = vmatprep.mubr.msk.f32.mxu0 %vm954_vm1, %v2554_v6 }
  0x6e   : > { %2784 = vmatmul.mubr.msk.f32.gmra.mxu1 %vm954_vm1, %v932_v10  ;;  %2798 = vmatmul.mubr.msk.f32.gmra.mxu0 %vm954_vm1, %v2555_v11 }
  0x6f   : > { %2786 = vmatprep.mubr.msk.f32.mxu1 %vm954_vm1, %v934_v18  ;;  %2800 = vmatprep.mubr.msk.f32.mxu0 %vm954_vm1, %v2556_v19 }
  0x72   : > { %2787 = vmatmul.mubr.msk.f32.gmra.mxu1 %vm954_vm1, %v936_v26  ;;  %2801 = vmatmul.mubr.msk.f32.gmra.mxu0 %vm954_vm1, %v2557_v27 }
  0x73   : > { %2805 = vmatprep.mubr.msk.f32.mxu1 %vm954_vm1, %v1681_v30  ;;  %2819 = vmatprep.mubr.msk.f32.mxu0 %vm954_vm1, %v3372_v20  ;;  %v1690_v20 = vsel %vm1228_vm2, %v1688_v37, %v1689_v40 }
  0x76   : > { %2806 = vmatmul.mubr.msk.f32.vlgmr.msra.gmra.mxu1 %vm954_vm1, %v1684_v38  ;;  %2820 = vmatmul.mubr.msk.f32.vlgmr.msra.gmra.mxu0 %vm954_vm1, %v3381_v25  ;;  %v1700_v25 = vrot.slane %v936_v26, 1 }
  0x77   : > { %2832 = vmatpush3.msk.msra.mxu1 %vm979_vm0, %v2628_v1  ;;  %2846 = vmatpush3.msk.msra.mxu0 %vm979_vm0, %v2638_v2 }
  0x78   : > { %2808 = vmatprep.mubr.msk.f32.mxu1 %vm954_vm1, %v1687_v47  ;;  %2822 = vmatprep.mubr.msk.f32.mxu0 %vm954_vm1, %v3388_v29  ;;  %v1701_v29 = vrot.slane %v937_v59, 1 }
  0x7a   : > { %2809 = vmatmul.mubr.msk.f32.gmra.mxu1 %vm954_vm1, %v1690_v20  ;;  %2823 = vmatmul.mubr.msk.f32.gmra.mxu0 %vm954_vm1, %v3392_v31  ;;  %v1702_v31 = vsel %vm1228_vm2, %v1700_v25, %v1701_v29 }
  0x7b   : > { %2811 = vmatprep.mubr.msk.f32.mxu1 %vm954_vm1, %v1693_v55  ;;  %2825 = vmatprep.mubr.msk.f32.mxu0 %vm954_vm1, %v3408_v39  ;;  %v948_v39 = vld [vmem:[%s809_s18 + $0x8] sm:$0x1] }
  0x7e   : > { %2812 = vmatmul.mubr.msk.f32.gmra.mxu1 %vm954_vm1, %v1696_v60  ;;  %2826 = vmatmul.mubr.msk.f32.gmra.mxu0 %vm954_vm1, %v3415_v42 }
  0x7f   : > { %2814 = vmatprep.mubr.msk.f32.mxu1 %vm954_vm1, %v1699_v61  ;;  %2828 = vmatprep.mubr.msk.f32.mxu0 %vm954_vm1, %v3443_v52 }
  0x82   : > { %2815 = vmatmul.mubr.msk.f32.gmra.mxu1 %vm954_vm1, %v1702_v31  ;;  %2829 = vmatmul.mubr.msk.f32.gmra.mxu0 %vm954_vm1, %v947_v62 }
  0x83   : > { %2833 = vmatprep.mubr.msk.f32.mxu1 %vm954_vm1, %v3336_v9  ;;  %2847 = vmatprep.mubr.msk.f32.mxu0 %vm954_vm1, %v3403_v34  ;;  %v2080_v9 = vrot.slane %v947_v62, 1 }
  0x86   : > { %2834 = vmatmul.mubr.msk.f32.vlgmr.msra.gmra.mxu1 %vm954_vm1, %v3352_v13  ;;  %2848 = vmatmul.mubr.msk.f32.vlgmr.msra.gmra.mxu0 %vm954_vm1, %v3412_v41  ;;  %v2081_v13 = vrot.slane %v948_v39, 1 }
  0x87   : > { %2836 = vmatprep.mubr.msk.f32.mxu1 %vm954_vm1, %v3362_v15  ;;  %2850 = vmatprep.mubr.msk.f32.mxu0 %vm954_vm1, %v3428_v45 }
  0x88   : > { %v2082_v15 = vsel %vm1228_vm2, %v2080_v9, %v2081_v13 }
  0x8a   : > { %2837 = vmatmul.mubr.msk.f32.gmra.mxu1 %vm954_vm1, %v3332_v8  ;;  %2851 = vmatmul.mubr.msk.f32.gmra.mxu0 %vm954_vm1, %v3439_v49  ;;  %v2558_v8 = vld [vmem:[%s809_s18 + $0x10] sm:$0xff] }
  0x8b   : > { %2839 = vmatprep.mubr.msk.f32.mxu1 %vm954_vm1, %v3349_v12  ;;  %2853 = vmatprep.mubr.msk.f32.mxu0 %vm954_vm1, %v3457_v54 }
  0x8e   : > { %2840 = vmatmul.mubr.msk.f32.gmra.mxu1 %vm954_vm1, %v3355_v14  ;;  %2854 = vmatmul.mubr.msk.f32.gmra.mxu0 %vm954_vm1, %v3461_v57 }
  0x8f   : > { %2842 = vmatprep.mubr.msk.f32.mxu1 %vm954_vm1, %v3365_v16  ;;  %2856 = vmatprep.mubr.msk.f32.mxu0 %vm954_vm1, %v3472_v58 }
  0x92   : > { %2843 = vmatmul.mubr.msk.f32.gmra.mxu1 %vm954_vm1, %v2558_v8  ;;  %2857 = vmatmul.mubr.msk.f32.gmra.mxu0 %vm954_vm1, %v2082_v15 }
 0x10e   : > { %v2737_v12 = vpop.f32.mrf.mxu0  ;;  %v2743_v34 = vpop.f32.mrf.mxu1 }
 0x110   : > { %v1049_v41 = vpop.f32.mrf.mxu0  ;;  %v1069_v14 = vpop.f32.mrf.mxu1 }
 0x112   : > { %v2740_v42 = vpop.f32.mrf.mxu0  ;;  %v2746_v45 = vpop.f32.mrf.mxu1 }
 0x114   : > { %v1059_v49 = vpop.f32.mrf.mxu0  ;;  %v3597_v52 = vpop.f32.mrf.mxu1 }
 0x116   : > { %v2751_v16 = vpop.f32.mrf.mxu1  ;;  %v2765_v54 = vpop.f32.mrf.mxu0 }
 0x117   : > { %v1187_v40 = vadd.f32 %v2751_v16, %v2737_v12 }
 0x118   : > { %v1181_v57 = vpop.f32.mrf.mxu1  ;;  %v1340_v58 = vpop.f32.mrf.mxu0 }
 0x119   : > { %v1182_v46 = vadd.f32 %v1181_v57, %v1049_v41  ;;  %v1380_v50 = vadd.f32 %v2765_v54, %v1187_v40 }
 0x11a   : > { %v2754_v63 = vpop.f32.mrf.mxu1  ;;  %v2768_v0 = vpop.f32.mrf.mxu0 }
 0x11b   : > { %v1197_v20 = vadd.f32 %v2754_v63, %v2740_v42  ;;  %v1379_v55 = vadd.f32 %v1340_v58, %v1182_v46 }
 0x11c   : > { %v1191_v1 = vpop.f32.mrf.mxu1  ;;  %v1350_v2 = vpop.f32.mrf.mxu0 }
 0x11d   : > { %v1192_v56 = vadd.f32 %v1191_v1, %v1059_v49  ;;  %v1382_v61 = vadd.f32 %v2768_v0, %v1197_v20 }
 0x11e   : > { %v2757_v3 = vpop.f32.mrf.mxu1  ;;  %v2771_v4 = vpop.f32.mrf.mxu0 }
 0x11f   : > { %v1207_v25 = vadd.f32 %v2757_v3, %v2743_v34  ;;  %v1381_v13 = vadd.f32 %v1350_v2, %v1192_v56 }
 0x120   : > { %v1201_v5 = vpop.f32.mrf.mxu1  ;;  %v1360_v6 = vpop.f32.mrf.mxu0 }
 0x121   : > { %v1202_v62 = vadd.f32 %v1201_v5, %v1069_v14  ;;  %v1384_v12 = vadd.f32 %v2771_v4, %v1207_v25 }
 0x122   : > { %v2760_v7 = vpop.f32.mrf.mxu1  ;;  %v2774_v10 = vpop.f32.mrf.mxu0 }
 0x123   : > { %v1217_v41 = vadd.f32 %v2760_v7, %v2746_v45  ;;  %v1383_v57 = vadd.f32 %v1360_v6, %v1202_v62 }
 0x124   : > { %v1211_v11 = vpop.f32.mrf.mxu1  ;;  %v3599_v17 = vpop.f32.mrf.mxu0 }
 0x125   : > { %v1212_v58 = vadd.f32 %v1211_v11, %v3597_v52  ;;  %v1386_v3 = vadd.f32 %v2774_v10, %v1217_v41  ;;  %v2648_v10 = vld [vmem:[%s3659_s4] ss:$0 sm:$0xff] }
 0x126   : > { %v2779_v18 = vpop.f32.mrf.mxu1  ;;  %v2793_v19 = vpop.f32.mrf.mxu0 }
 0x127   : > { %v1522_v59 = vadd.f32 %v2779_v18, %v1380_v50  ;;  %v1385_v6 = vadd.f32 %v3599_v17, %v1212_v58 }
 0x128   : > { %v1482_v21 = vpop.f32.mrf.mxu1  ;;  %v1624_v22 = vpop.f32.mrf.mxu0 }
 0x129   : > { %v1521_v31 = vadd.f32 %v1482_v21, %v1379_v55  ;;  %v1664_v8 = vadd.f32 %v2793_v19, %v1522_v59 }
 0x12a   : > { %v2782_v23 = vpop.f32.mrf.mxu1  ;;  %v2796_v24 = vpop.f32.mrf.mxu0 }
 0x12b   : > { %v1524_v15 = vadd.f32 %v2782_v23, %v1382_v61  ;;  %v1663_v49 = vadd.f32 %v1624_v22, %v1521_v31 }
 0x12c   : > { %v1492_v26 = vpop.f32.mrf.mxu1  ;;  %v1634_v27 = vpop.f32.mrf.mxu0 }
 0x12d   : > { %v1523_v54 = vadd.f32 %v1492_v26, %v1381_v13  ;;  %v1666_v1 = vadd.f32 %v2796_v24, %v1524_v15 }
 0x12e   : > { %v2785_v28 = vpop.f32.mrf.mxu1  ;;  %v2799_v30 = vpop.f32.mrf.mxu0 }
 0x12f   : > { %v1526_v63 = vadd.f32 %v2785_v28, %v1384_v12  ;;  %v1665_v7 = vadd.f32 %v1634_v27, %v1523_v54 }
 0x130   : > { %v1502_v32 = vpop.f32.mrf.mxu1  ;;  %v1644_v33 = vpop.f32.mrf.mxu0 }
 0x131   : > { %v1525_v4 = vadd.f32 %v1502_v32, %v1383_v57  ;;  %v1668_v21 = vadd.f32 %v2799_v30, %v1526_v63 }
 0x132   : > { %v2788_v35 = vpop.f32.mrf.mxu1  ;;  %v3601_v36 = vpop.f32.mrf.mxu0 }
 0x133   : > { %v1528_v52 = vadd.f32 %v2788_v35, %v1386_v3  ;;  %v1667_v28 = vadd.f32 %v1644_v33, %v1525_v4 }
 0x134   : > { %v1512_v37 = vpop.f32.mrf.mxu1  ;;  %v3603_v38 = vpop.f32.mrf.mxu0 }
 0x135   : > { %v1527_v40 = vadd.f32 %v1512_v37, %v1385_v6  ;;  %v1670_v30 = vadd.f32 %v3601_v36, %v1528_v52 }
 0x136   : > { %v2807_v43 = vpop.f32.mrf.mxu1  ;;  %v2821_v44 = vpop.f32.mrf.mxu0 }
 0x137   : > { %v1830_v34 = vadd.f32 %v2807_v43, %v1664_v8 }
 0x138   : > { %v1790_v47 = vpop.f32.mrf.mxu1  ;;  %v1911_v48 = vpop.f32.mrf.mxu0 }
 0x139   : > { %v1829_v2 = vadd.f32 %v1790_v47, %v1663_v49  ;;  %v1951_v18 = vadd.f32 %v2821_v44, %v1830_v34 }
 0x13a   : > { %v2810_v51 = vpop.f32.mrf.mxu1  ;;  %v2824_v53 = vpop.f32.mrf.mxu0 }
 0x13b   : > { %v1832_v19 = vadd.f32 %v2810_v51, %v1666_v1  ;;  %v1950_v23 = vadd.f32 %v1911_v48, %v1829_v2  ;;  %v1669_v51 = vadd.f32 %v3603_v38, %v1527_v40 }
 0x13c   : > { %v1800_v60 = vpop.f32.mrf.mxu1  ;;  %v1921_v29 = vpop.f32.mrf.mxu0 }
 0x13d   : > { %v1831_v24 = vadd.f32 %v1800_v60, %v1665_v7  ;;  %v1953_v44 = vadd.f32 %v2824_v53, %v1832_v19 }
 0x13e   : > { %v2813_v39 = vpop.f32.mrf.mxu1  ;;  %v2827_v9 = vpop.f32.mrf.mxu0 }
 0x13f   : > { %v1834_v43 = vadd.f32 %v2813_v39, %v1668_v21  ;;  %v1952_v47 = vadd.f32 %v1921_v29, %v1831_v24 }
 0x140   : > { %v1810_v42 = vpop.f32.mrf.mxu1  ;;  %v1931_v16 = vpop.f32.mrf.mxu0 }
 0x141   : > { %v1833_v35 = vadd.f32 %v1810_v42, %v1667_v28  ;;  %v1955_v53 = vadd.f32 %v2827_v9, %v1834_v43 }
 0x142   : > { %v2816_v14 = vpop.f32.mrf.mxu1  ;;  %v2830_v0 = vpop.f32.mrf.mxu0 }
 0x143   : > { %v1836_v36 = vadd.f32 %v2816_v14, %v1670_v30  ;;  %v1954_v61 = vadd.f32 %v1931_v16, %v1833_v35 }
 0x144   : > { %v1820_v45 = vpop.f32.mrf.mxu1  ;;  %v1941_v5 = vpop.f32.mrf.mxu0 }
 0x145   : > { %v1835_v29 = vadd.f32 %v1820_v45, %v1669_v51  ;;  %v1957_v15 = vadd.f32 %v2830_v0, %v1836_v36 }
 0x146   : > { %v2835_v11 = vpop.f32.mrf.mxu1  ;;  %v2849_v22 = vpop.f32.mrf.mxu0 }
 0x147   : > { %v2072_v26 = vadd.f32 %v2835_v11, %v1951_v18  ;;  %v1956_v54 = vadd.f32 %v1941_v5, %v1835_v29 }
 0x148   : > { %v2032_v27 = vpop.f32.mrf.mxu1  ;;  %v2156_v32 = vpop.f32.mrf.mxu0 }
 0x149   : > { %v2196_v46 = vadd.f32 %v2849_v22, %v2072_v26  ;;  %v2071_v17 = vadd.f32 %v2032_v27, %v1950_v23 }
 0x14a   : > { %v2838_v33 = vpop.f32.mrf.mxu1  ;;  %v2852_v37 = vpop.f32.mrf.mxu0 }
 0x14b   : > { %v2211_v48 = vadd.f32 %v2648_v10, %v2196_v46  ;;  %v2195_v50 = vadd.f32 %v2156_v32, %v2071_v17  ;;  %v2074_v20 = vadd.f32 %v2838_v33, %v1953_v44 }
 0x14c   : > { %v2042_v55 = vpop.f32.mrf.mxu1  ;;  %v2166_v56 = vpop.f32.mrf.mxu0 }
 0x14d   : > { %2219 = vst.msk [vmem:[%s3621_s28 + $0x8] sm:$0xff] %vm954_vm1, %v2211_v48  ;;  %v2210_v59 = vadd.f32 %v2648_v10, %v2195_v50  ;;  %v2198_v25 = vadd.f32 %v2852_v37, %v2074_v20  ;;  %v2073_v60 = vadd.f32 %v2042_v55, %v1952_v47 }
 0x14e   : > { %v2841_v31 = vpop.f32.mrf.mxu1  ;;  %v2855_v62 = vpop.f32.mrf.mxu0 }
 0x14f   : > { %2218 = vst.msk [vmem:[%s3621_s28] sm:$0xff] %vm954_vm1, %v2210_v59  ;;  %v2213_v39 = vadd.f32 %v2648_v10, %v2198_v25  ;;  %v2197_v13 = vadd.f32 %v2166_v56, %v2073_v60  ;;  %v2076_v38 = vadd.f32 %v2841_v31, %v1955_v53 }
 0x150   : > { %v2052_v9 = vpop.f32.mrf.mxu1  ;;  %v2176_v8 = vpop.f32.mrf.mxu0 }
 0x151   : > { %2221 = vst.msk [vmem:[%s3621_s28 + $0x18] sm:$0xff] %vm954_vm1, %v2213_v39  ;;  %v2212_v12 = vadd.f32 %v2648_v10, %v2197_v13  ;;  %v2200_v41 = vadd.f32 %v2855_v62, %v2076_v38  ;;  %v2075_v42 = vadd.f32 %v2052_v9, %v1954_v61 }
 0x152   : > { %v2844_v16 = vpop.f32.mrf.mxu1  ;;  %v2858_v49 = vpop.f32.mrf.mxu0 }
 0x153   : > { %2220 = vst.msk [vmem:[%s3621_s28 + $0x10] sm:$0xff] %vm954_vm1, %v2212_v12  ;;  %v2215_v34 = vadd.f32 %v2648_v10, %v2200_v41  ;;  %v2199_v57 = vadd.f32 %v2176_v8, %v2075_v42  ;;  %v2078_v58 = vadd.f32 %v2844_v16, %v1957_v15 }
 0x154   : > { %v2062_v63 = vpop.f32.mrf.mxu1  ;;  %v2186_v2 = vpop.f32.mrf.mxu0 }
 0x155   : > { %2223 = vst.msk [vmem:[%s3621_s28 + $0x28] sm:$0xff] %vm954_vm1, %v2215_v34  ;;  %v2214_v14 = vadd.f32 %v2648_v10, %v2199_v57  ;;  %v2202_v0 = vadd.f32 %v2858_v49, %v2078_v58  ;;  %v2077_v1 = vadd.f32 %v2062_v63, %v1956_v54 }
 0x157   : > { %2222 = vst.msk [vmem:[%s3621_s28 + $0x20] sm:$0xff] %vm954_vm1, %v2214_v14  ;;  %v2217_v3 = vadd.f32 %v2648_v10, %v2202_v0  ;;  %v2201_v4 = vadd.f32 %v2186_v2, %v2077_v1 }
 0x159   : > { %2225 = vst.msk [vmem:[%s3621_s28 + $0x38] sm:$0xff] %vm954_vm1, %v2217_v3  ;;  %v2216_v45 = vadd.f32 %v2648_v10, %v2201_v4 }
 0x15b   : > { %2224 = vst.msk [vmem:[%s3621_s28 + $0x30] sm:$0xff] %vm954_vm1, %v2216_v45 }
 0x15c PF: > { %s15_s22 = sadd.s32 1, %s3036_s22   ;;  %s3664_s18 = smov %s3024_s19 }
 0x15d   : > { %p12_p12 = scmp.ge.s32.totalorder %s15_s22, 4   ;;  %s3665_s19 = smov %s3119_s27 }
 0x15e   : > { %s3666_s20 = smov %s3032_s21  ;;  %s3667_s21 = smov %s3669_s23 }
 0x15f   :  { %14 = sbr.rel (!%p12_p12) target bundleno = 3 (0x3), region = 310 }

</bundles_post_ra>
